<compile_context>
chip_gen: v7x
topology: tpu7x:2x2x1
jax: 0.10.0
libtpu: 0.0.40
codegen_flags: <defaults>
</compile_context>

<pallas_src>
import functools

import jax
import jax.numpy as jnp
import numpy as np
from jax.experimental import pallas as pl
from jax.experimental.pallas import tpu as pltpu


def _maxpool2d_1xk_kernel(x_ref, o_ref, *, k_h, k_w, s_h, s_w, h_out, w_out):
    # ---- H window + stride: k_h sublane-strided loads + elementwise max --------
    # For this module k_h == 1, so the row subsampling happens entirely at load
    # time via a native sublane-strided vector load (no separate reduction step).
    rows = x_ref[:, :, pl.ds(0, h_out, stride=s_h), :]           # (B, C, h_out, W)
    for dh in range(1, k_h):                                     # generic k_h > 1
        rows = jnp.maximum(rows, x_ref[:, :, pl.ds(dh, h_out, stride=s_h), :])

    # ---- W window + stride: one masked max-reduction over the lane axis --------
    W = x_ref.shape[-1]
    # mask_w[j, w] == True iff output column j's window covers input column w.
    j_idx = jax.lax.broadcasted_iota(jnp.int32, (w_out, W), 0)
    w_idx = jax.lax.broadcasted_iota(jnp.int32, (w_out, W), 1)
    mask_w = (w_idx >= j_idx * s_w) & (w_idx < j_idx * s_w + k_w)

    if jnp.issubdtype(rows.dtype, jnp.floating):
        fill = jnp.array(-jnp.inf, dtype=rows.dtype)
    else:
        fill = jnp.array(jnp.iinfo(rows.dtype).min, dtype=rows.dtype)

    # (B, C, h_out, 1, W) vs (1, 1, 1, w_out, W) -> max over W (minor/lane axis).
    out = jnp.max(
        jnp.where(mask_w[None, None, None, :, :], rows[:, :, :, None, :], fill),
        axis=-1,
    )                                                            # (B, C, h_out, w_out)
    o_ref[...] = out.astype(o_ref.dtype)


def maxpool2d_1xk(x, k_size, stride=2):
    """Forward of P: nn.MaxPool2d((1, k_size), stride=stride), no padding/dilation."""
    B, C, H, W = x.shape
    k_h, k_w = 1, int(k_size)
    s_h = s_w = int(stride)
    h_out = (H - k_h) // s_h + 1
    w_out = (W - k_w) // s_w + 1

    kernel = functools.partial(
        _maxpool2d_1xk_kernel,
        k_h=k_h, k_w=k_w, s_h=s_h, s_w=s_w, h_out=h_out, w_out=w_out,
    )

    # Single invocation, whole arrays resident in VMEM, single dense writeback.
    return pl.pallas_call(
        kernel,
        out_shape=jax.ShapeDtypeStruct((B, C, h_out, w_out), x.dtype),
        in_specs=[pl.BlockSpec(memory_space=pltpu.MemorySpace.VMEM)],
        out_specs=pl.BlockSpec(memory_space=pltpu.MemorySpace.VMEM),
    )(x)


def maxpool2d_1xk_ref(x, k_size, stride=2):
    """Pure-JAX reference (matches PyTorch nn.MaxPool2d((1, k_size), stride))."""
    return jax.lax.reduce_window(
        x,
        jnp.array(-jnp.inf, x.dtype),
        jax.lax.max,
        window_dimensions=(1, 1, 1, int(k_size)),
        window_strides=(1, 1, int(stride), int(stride)),
        padding="VALID",
    )


if __name__ == "__main__":
    # P(kSize=2, stride=2) on input (batch=2, channels=4, 16x16).
    K_SIZE, STRIDE = 2, 2
    B, C, H, W = 2, 4, 16, 16

    x = jax.random.normal(jax.random.PRNGKey(0), (B, C, H, W), jnp.float32)

    fwd = jax.jit(functools.partial(maxpool2d_1xk, k_size=K_SIZE, stride=STRIDE))
    out = jax.block_until_ready(fwd(x))

    h_out = (H - 1) // STRIDE + 1
    w_out = (W - K_SIZE) // STRIDE + 1
    assert out.shape == (B, C, h_out, w_out), out.shape

    # Bit-exact check against the XLA reduce_window reference (pure max/select).
    ref = jax.block_until_ready(maxpool2d_1xk_ref(x, K_SIZE, STRIDE))
    np.testing.assert_allclose(np.asarray(out), np.asarray(ref), atol=0.0, rtol=0.0)

    print("KERNEL_OK")
</pallas_src>

<mosaic_0001>
module attributes {stable_mosaic.version = 11 : i64} {
  func.func @_maxpool2d_1xk_kernel(%arg0: memref<2x4x16x16xf32, #tpu.memory_space<vmem>>, %arg1: memref<2x4x8x8xf32, #tpu.memory_space<vmem>>) attributes {dimension_semantics = [], scalar_prefetch = 0 : i64, scratch_operands = 0 : i64, tpu.core_type = #tpu.core_type<tc>} {
    %c0 = arith.constant 0 : index
    %c0_0 = arith.constant 0 : index
    %c0_1 = arith.constant 0 : index
    %c0_2 = arith.constant 0 : index
    %0 = tpu.strided_load %arg0[%c0, %c0_0, %c0_1, %c0_2] {strides = array<i32: 1, 1, 2, 1>} : memref<2x4x16x16xf32, #tpu.memory_space<vmem>>, vector<2x4x8x16xf32>
    %1 = tpu.iota {dimensions = array<i32: 0>} : vector<8x16xi32>
    %2 = tpu.iota {dimensions = array<i32: 1>} : vector<8x16xi32>
    %c2_i32 = arith.constant 2 : i32
    %3 = vector.broadcast %c2_i32 : i32 to vector<8x16xi32>
    %4 = arith.muli %1, %3 : vector<8x16xi32>
    %5 = arith.cmpi sge, %2, %4 : vector<8x16xi32>
    %c2_i32_3 = arith.constant 2 : i32
    %6 = vector.broadcast %c2_i32_3 : i32 to vector<8x16xi32>
    %7 = arith.muli %1, %6 : vector<8x16xi32>
    %c2_i32_4 = arith.constant 2 : i32
    %8 = vector.broadcast %c2_i32_4 : i32 to vector<8x16xi32>
    %9 = arith.addi %7, %8 : vector<8x16xi32>
    %10 = arith.cmpi slt, %2, %9 : vector<8x16xi32>
    %11 = arith.andi %5, %10 : vector<8x16xi1>
    %12 = vector.shape_cast %11 : vector<8x16xi1> to vector<1x1x1x8x16xi1>
    %13 = vector.shape_cast %0 : vector<2x4x8x16xf32> to vector<2x4x8x1x16xf32>
    %cst = arith.constant 0xFF800000 : f32
    %14 = vector.shape_cast %12 : vector<1x1x1x8x16xi1> to vector<1x1x1x8x16xi1>
    %15 = vector.broadcast %14 : vector<1x1x1x8x16xi1> to vector<2x4x8x8x16xi1>
    %16 = vector.shape_cast %13 : vector<2x4x8x1x16xf32> to vector<2x4x8x1x16xf32>
    %17 = vector.broadcast %16 : vector<2x4x8x1x16xf32> to vector<2x4x8x8x16xf32>
    %18 = vector.broadcast %cst : f32 to vector<2x4x8x8x16xf32>
    %19 = arith.select %15, %17, %18 : vector<2x4x8x8x16xi1>, vector<2x4x8x8x16xf32>
    %cst_5 = arith.constant dense<0xFF800000> : vector<2x4x8x8xf32>
    %20 = vector.multi_reduction <maximumf>, %19, %cst_5 [4] : vector<2x4x8x8x16xf32> to vector<2x4x8x8xf32>
    %c0_6 = arith.constant 0 : index
    %c0_7 = arith.constant 0 : index
    %c0_8 = arith.constant 0 : index
    %c0_9 = arith.constant 0 : index
    %21 = vector.load %arg1[%c0_6, %c0_7, %c0_8, %c0_9] : memref<2x4x8x8xf32, #tpu.memory_space<vmem>>, vector<2x4x8x8xf32>
    tpu.vector_store %arg1[%c0_6, %c0_7, %c0_8, %c0_9], %20 {strides = array<i32>} : memref<2x4x8x8xf32, #tpu.memory_space<vmem>>, vector<2x4x8x8xf32>,
    return
  }
}

</mosaic_0001>

<bundles_post_ra>
// kernel: maxpool2d_1xk.1
= control target key start
LH: loop header
LB: loop body
LE: loop exit
PB: predicated region body
PF: predicated region fallthrough
CT: control target
= control target key end

     0   :  { %6 = vsyncpa [#allocation3], 0  ;;  %s2129_s0 = inlined_call_operand.hbm [shape: f32[2,4,16,16], index: 0, kind: input, shape index: {}]   ;;  %s2130_s1 = inlined_call_operand.hbm [shape: f32[2,4,8,8], index: 1, kind: output, shape index: {}]  }
   0x1   :  { %7 = vsyncpa [#allocation4], 0  ;;  %s1496_s6 = smov [#allocation2]   ;;  %s1448_s10 = scalar_lea.hbm %s2129_s0, 2048 }
   0x2   :  { %s13_s7 = sshll.u32 %s1496_s6, 4  ;;  %p1449_p0 = scmp.ne.s32.totalorder %s2129_s0, %s1448_s10  ;;  %s14_s7 = int_to_ptr.vmem [resolvable:$true] %s13_s7 }
   0x3   :  { %p1452_p1 = scmp.lt.u32.totalorder %s1448_s10, %s2129_s0 }
   0x5   :  { %p1454_p2 = pnand %p1452_p1, %p1449_p0 }
   0x7   :  { %1457 = shalt.err (!%p1454_p2)
}
   0x8   :  { %s1458_s15 = scalar_lea.vmem %s14_s7, 2048  ;;  %p1463_p4 = scmp.lt.s32.totalorder %s14_s7, %s14_s7 }
   0x9   :  { %p1459_p3 = scmp.ne.s32.totalorder %s14_s7, %s1458_s15  ;;  %p1464_p5 = scmp.lt.s32.totalorder %s1458_s15, %s1458_s15 }
   0xb   :  { %p1465_p6 = por %p1464_p5, %p1463_p4 }
   0xd   :  { %p1466_p7 = pnand %p1465_p6, %p1459_p3 }
   0xf   :  { %1469 = shalt.err (!%p1466_p7)
}
  0x10   :  { %s1497_s16 = smov 128   ;;  %s1498_s17 = smov 8  }
  0x11   :  { %19 = dma.hbm_to_vmem [thread:$0]  %s2129_s0, 2048, %s14_s7, [#allocation3], %s1497_s16, %s1497_s16, %s1498_s17  }
  0x12   :  { %1492 = dma.done.wait [#allocation3], 2048  }
  0x13   :  { %1493 = vsyncadd [#allocation3], 4294965248  ;;  %v38_v0 = vlaneseq  ;;  %v1499_v1 = vmov 1966171168   ;;  %v23_v10 = vld [vmem:[#allocation2] ss:$2 sm:$0xff] }
  0x14   :  { %v57_v2 = vunpack.c.l.s4 %v1499_v1  ;;  %v25_v12 = vld [vmem:[#allocation2 + $0x10] ss:$2 sm:$0xff]  ;;  %v55_v14 = vcombine.high %v23_v10, %v23_v10  ;;  %vm833_vm3 = vcmask 130048   ;;  %v27_v61 = vld [vmem:[#allocation2 + $0x20] ss:$2 sm:$0xff]  ;;  %vm1346_vm4 = vcmask 1041409  }
  0x15   :  { %v39_v3 = vshrl.u32 %v38_v0, 7  ;;  %v41_v4 = vand.u32 127, %v38_v0  ;;  %v104_v39 = vcombine.high %v25_v12, %v25_v12  ;;  %vm1348_vm5 = vcmask 1042434   ;;  %s1500_s0 = smov [#allocation5]  }
  0x16   :  { %v58_v5 = vunpack.c.0.s8 %v57_v2  ;;  %vm1350_vm6 = vcmask 1043459   ;;  %vm1352_vm7 = vcmask 1044484   ;;  %vm1354_vm8 = vcmask 1045509   ;;  %s1431_s20 = sshll.u32 %s1500_s0, 4  ;;  %s1432_s20 = int_to_ptr.vmem [resolvable:$true] %s1431_s20 }
  0x17   :  { %v42_v6 = vmul.u32 2, %v39_v3  ;;  %v1526_v7 = vsub.s32 %v41_v4, %v39_v3  ;;  %v1530_v11 = vsub.s32 0, %v39_v3  ;;  %vm1356_vm9 = vcmask 1046534   ;;  %s1470_s21 = scalar_lea.vmem %s1432_s20, 1024  ;;  %p1475_p9 = scmp.lt.s32.totalorder %s1432_s20, %s1432_s20 }
  0x18   :  { %v1528_v8 = vsub.s32 %v58_v5, %v39_v3  ;;  %vm1358_vm10 = vcmask 1047559   ;;  %vm1417_vm11 = vcmask 64512   ;;  %p1471_p8 = scmp.ne.s32.totalorder %s1432_s20, %s1470_s21  ;;  %p1476_p10 = scmp.lt.s32.totalorder %s1470_s21, %s1470_s21 }
  0x19   :  { %v44_v9 = vadd.s32 2, %v42_v6  ;;  %vm43_vm0 = vcmp.ge.s32.totalorder %v41_v4, %v42_v6 }
  0x1a   :  { %v62_v13 = vrot.slane %v23_v10, %v1528_v8  ;;  %v111_v15 = vrot.slane %v25_v12, %v1528_v8  ;;  %v69_v21 = vrot.slane %v55_v14, %v1528_v8  ;;  %v118_v50 = vrot.slane %v104_v39, %v1528_v8  ;;  %p1477_p11 = por %p1476_p10, %p1475_p9 }
  0x1b   :  { %vm45_vm1 = vcmp.lt.s32.totalorder %v41_v4, %v44_v9  ;;  %v160_v5 = vrot.slane %v27_v61, %v1528_v8  ;;  %v153_v14 = vcombine.high %v27_v61, %v27_v61 }
  0x1c   :  { %v78_v16 = vrot.slane %v62_v13, %v1528_v8  ;;  %v127_v17 = vrot.slane %v111_v15, %v1528_v8  ;;  %v119_v18 = vcombine.high %v111_v15, %v111_v15  ;;  %v70_v19 = vcombine.high %v62_v13, %v62_v13  ;;  %vm1536_vm2 = vmand %vm43_vm0, %vm45_vm1  ;;  %p1478_p12 = pnand %p1477_p11, %p1471_p8 }
  0x1d   :  { %v85_v27 = vrot.slane %v69_v21, %v1528_v8  ;;  %v71_v28 = vcombine.high %v69_v21, %v69_v21  ;;  %v120_v59 = vcombine.high %v118_v50, %v118_v50  ;;  %v134_v0 = vrot.slane %v118_v50, %v1528_v8 }
  0x1e   :  { %v452_v22 = vrot.slane %v78_v16, %v1530_v11  ;;  %v100_v23 = vcombine.high %v78_v16, %v78_v16  ;;  %v484_v24 = vrot.slane %v127_v17, %v1530_v11  ;;  %v141_v25 = vrot.slane %v119_v18, %v1528_v8 }
  0x1f   :  { %v92_v26 = vrot.slane %v70_v19, %v1528_v8  ;;  %v99_v38 = vrot.slane %v71_v28, %v1528_v8  ;;  %v468_v44 = vrot.slane %v85_v27, %v1530_v11  ;;  %v149_v45 = vcombine.high %v127_v17, %v127_v17 }
  0x20   :  { %v769_v29 = vsel %vm1536_vm2, %v452_v22, -inf  ;;  %v460_v30 = vrot.slane %v100_v23, %v1530_v11  ;;  %v777_v31 = vsel %vm1536_vm2, %v484_v24, -inf  ;;  %v488_v32 = vrot.slane %v141_v25, %v1530_v11 }
  0x21   :  { %v834_v33 = vsel %vm833_vm3, %v769_v29, -inf  ;;  %v456_v34 = vrot.slane %v92_v26, %v1530_v11  ;;  %v102_v35 = vcombine.high %v92_v26, %v92_v26  ;;  %v858_v41 = vsel %vm833_vm3, %v777_v31, -inf }
  0x22   :  { %835 = vmax.xlane.f32.xlu0 %v834_v33  ;;  %v771_v36 = vsel %vm1536_vm2, %v460_v30, -inf  ;;  %v778_v37 = vsel %vm1536_vm2, %v488_v32, -inf  ;;  %v472_v48 = vrot.slane %v99_v38, %v1530_v11  ;;  %v151_v49 = vcombine.high %v141_v25, %v141_v25  ;;  %v1612_v33 = vld [vmem:[#allocation2 + $0x30] ss:$2 sm:$0xff] }
  0x23   :  { %v840_v40 = vsel %vm833_vm3, %v771_v36, -inf  ;;  %v464_v42 = vrot.slane %v102_v35, %v1530_v11  ;;  %v770_v43 = vsel %vm1536_vm2, %v456_v34, -inf  ;;  %v861_v46 = vsel %vm833_vm3, %v778_v37, -inf }
  0x24   :  { %841 = vmax.xlane.f32.xlu1 %v840_v40  ;;  %v837_v51 = vsel %vm833_vm3, %v770_v43, -inf  ;;  %v773_v52 = vsel %vm1536_vm2, %v468_v44, -inf  ;;  %v492_v53 = vrot.slane %v149_v45, %v1530_v11  ;;  %v101_v54 = vcombine.high %v85_v27, %v85_v27  ;;  %v1626_v45 = vld [vmem:[#allocation2 + $0x40] ss:$2 sm:$0xff] }
  0x25   :  { %v772_v47 = vsel %vm1536_vm2, %v464_v42, -inf  ;;  %v774_v56 = vsel %vm1536_vm2, %v472_v48, -inf  ;;  %v496_v57 = vrot.slane %v151_v49, %v1530_v11  ;;  %v103_v58 = vcombine.high %v99_v38, %v99_v38 }
  0x26   :  { %859 = vmax.xlane.f32.xlu0 %v858_v41  ;;  %v843_v55 = vsel %vm833_vm3, %v772_v47, -inf  ;;  %v846_v60 = vsel %vm833_vm3, %v773_v52, -inf  ;;  %v779_v62 = vsel %vm1536_vm2, %v492_v53, -inf  ;;  %v476_v63 = vrot.slane %v101_v54, %v1530_v11 }
  0x27   :  { %v849_v1 = vsel %vm833_vm3, %v774_v56, -inf  ;;  %v780_v2 = vsel %vm1536_vm2, %v496_v57, -inf  ;;  %v480_v3 = vrot.slane %v103_v58, %v1530_v11  ;;  %v148_v4 = vrot.slane %v120_v59, %v1528_v8  ;;  %v1641_v56 = vld [vmem:[#allocation2 + $0x50] ss:$2 sm:$0xff] }
  0x28   :  { %862 = vmax.xlane.f32.xlu1 %v861_v46  ;;  %v864_v6 = vsel %vm833_vm3, %v779_v62, -inf  ;;  %v775_v9 = vsel %vm1536_vm2, %v476_v63, -inf  ;;  %v500_v10 = vrot.slane %v134_v0, %v1530_v11  ;;  %v150_v12 = vcombine.high %v134_v0, %v134_v0 }
  0x29   :  { %v867_v13 = vsel %vm833_vm3, %v780_v2, -inf  ;;  %v776_v15 = vsel %vm1536_vm2, %v480_v3, -inf  ;;  %v504_v16 = vrot.slane %v148_v4, %v1530_v11  ;;  %v152_v17 = vcombine.high %v148_v4, %v148_v4  ;;  %v1660_v3 = vld [vmem:[#allocation2 + $0x60] ss:$2 sm:$0xff] }
  0x2a   :  { %838 = vmax.xlane.f32.xlu0 %v837_v51  ;;  %v168_v18 = vcombine.high %v160_v5, %v160_v5  ;;  %v852_v19 = vsel %vm833_vm3, %v775_v9, -inf  ;;  %v781_v21 = vsel %vm1536_vm2, %v500_v10, -inf  ;;  %v508_v22 = vrot.slane %v150_v12, %v1530_v11 }
  0x2b   :  { %v176_v23 = vrot.slane %v160_v5, %v1528_v8  ;;  %v855_v24 = vsel %vm833_vm3, %v776_v15, -inf  ;;  %v782_v25 = vsel %vm1536_vm2, %v504_v16, -inf  ;;  %v512_v26 = vrot.slane %v152_v17, %v1530_v11  ;;  %v1678_v17 = vld [vmem:[#allocation2 + $0x70] ss:$2 sm:$0xff] }
  0x2c   :  { %844 = vmax.xlane.f32.xlu1 %v843_v55  ;;  %v190_v27 = vrot.slane %v168_v18, %v1528_v8  ;;  %v167_v28 = vrot.slane %v153_v14, %v1528_v8  ;;  %v870_v29 = vsel %vm833_vm3, %v781_v21, -inf  ;;  %v783_v30 = vsel %vm1536_vm2, %v508_v22, -inf }
  0x2d   :  { %v516_v31 = vrot.slane %v176_v23, %v1530_v11  ;;  %v198_v32 = vcombine.high %v176_v23, %v176_v23  ;;  %v873_v34 = vsel %vm833_vm3, %v782_v25, -inf  ;;  %v784_v35 = vsel %vm1536_vm2, %v512_v26, -inf }
  0x2e   :  { %847 = vmax.xlane.f32.xlu0 %v846_v60  ;;  %v520_v36 = vrot.slane %v190_v27, %v1530_v11  ;;  %v200_v37 = vcombine.high %v190_v27, %v190_v27  ;;  %v169_v38 = vcombine.high %v167_v28, %v167_v28  ;;  %v876_v39 = vsel %vm833_vm3, %v783_v30, -inf }
  0x2f   :  { %v209_v40 = vrot.slane %v1612_v33, %v1528_v8  ;;  %v785_v41 = vsel %vm1536_vm2, %v516_v31, -inf  ;;  %v524_v42 = vrot.slane %v198_v32, %v1530_v11  ;;  %v183_v43 = vrot.slane %v167_v28, %v1528_v8 }
  0x30   :  { %850 = vmax.xlane.f32.xlu1 %v849_v1  ;;  %v879_v44 = vsel %vm833_vm3, %v784_v35, -inf  ;;  %v786_v46 = vsel %vm1536_vm2, %v520_v36, -inf  ;;  %v528_v47 = vrot.slane %v200_v37, %v1530_v11  ;;  %v1632_v48 = vrot.slane %v169_v38, %v1528_v8 }
  0x31   :  { %v882_v49 = vsel %vm833_vm3, %v785_v41, -inf  ;;  %v217_v50 = vcombine.high %v209_v40, %v209_v40  ;;  %v787_v51 = vsel %vm1536_vm2, %v524_v42, -inf  ;;  %v532_v52 = vrot.slane %v183_v43, %v1530_v11 }
  0x32   :  { %865 = vmax.xlane.f32.xlu0 %v864_v6  ;;  %v199_v53 = vcombine.high %v183_v43, %v183_v43  ;;  %v258_v54 = vrot.slane %v1626_v45, %v1528_v8  ;;  %v885_v55 = vsel %vm833_vm3, %v786_v46, -inf  ;;  %v788_v57 = vsel %vm1536_vm2, %v528_v47, -inf }
  0x33   :  { %v536_v58 = vrot.slane %v1632_v48, %v1530_v11  ;;  %v1648_v59 = vrot.slane %v209_v40, %v1528_v8  ;;  %v888_v60 = vsel %vm833_vm3, %v787_v51, -inf  ;;  %v1652_v61 = vrot.slane %v217_v50, %v1528_v8 }
  0x34   :  { %868 = vmax.xlane.f32.xlu1 %v867_v13  ;;  %v789_v62 = vsel %vm1536_vm2, %v532_v52, -inf  ;;  %v540_v63 = vrot.slane %v199_v53, %v1530_v11  ;;  %v266_v0 = vcombine.high %v258_v54, %v258_v54  ;;  %v307_v1 = vrot.slane %v1641_v56, %v1528_v8 }
  0x35   :  { %v891_v2 = vsel %vm833_vm3, %v788_v57, -inf  ;;  %v790_v4 = vsel %vm1536_vm2, %v536_v58, -inf  ;;  %v548_v5 = vrot.slane %v1648_v59, %v1530_v11  ;;  %v274_v6 = vrot.slane %v258_v54, %v1528_v8 }
  0x36   :  { %853 = vmax.xlane.f32.xlu0 %v852_v19  ;;  %v894_v9 = vsel %vm833_vm3, %v789_v62, -inf  ;;  %v552_v10 = vrot.slane %v1652_v61, %v1530_v11  ;;  %v791_v12 = vsel %vm1536_vm2, %v540_v63, -inf  ;;  %v1673_v13 = vrot.slane %v266_v0, %v1528_v8 }
  0x37   :  { %v315_v14 = vcombine.high %v307_v1, %v307_v1  ;;  %v356_v15 = vrot.slane %v1660_v3, %v1528_v8  ;;  %v897_v16 = vsel %vm833_vm3, %v790_v4, -inf  ;;  %v793_v18 = vsel %vm1536_vm2, %v548_v5, -inf }
  0x38   :  { %856 = vmax.xlane.f32.xlu1 %v855_v24  ;;  %v580_v19 = vrot.slane %v274_v6, %v1530_v11  ;;  %v323_v21 = vrot.slane %v307_v1, %v1528_v8  ;;  %v900_v22 = vsel %vm833_vm3, %v791_v12, -inf  ;;  %v794_v23 = vsel %vm1536_vm2, %v552_v10, -inf }
  0x39   :  { %v584_v24 = vrot.slane %v1673_v13, %v1530_v11  ;;  %v1690_v25 = vrot.slane %v315_v14, %v1528_v8  ;;  %v364_v26 = vcombine.high %v356_v15, %v356_v15  ;;  %v405_v27 = vrot.slane %v1678_v17, %v1528_v8 }
  0x3a   :  { %871 = vmax.xlane.f32.xlu0 %v870_v29  ;;  %v906_v28 = vsel %vm833_vm3, %v793_v18, -inf  ;;  %v801_v29 = vsel %vm1536_vm2, %v580_v19, -inf  ;;  %v612_v30 = vrot.slane %v323_v21, %v1530_v11  ;;  %v372_v31 = vrot.slane %v356_v15, %v1528_v8 }
  0x3b   :  { %v909_v32 = vsel %vm833_vm3, %v794_v23, -inf  ;;  %v616_v35 = vrot.slane %v1690_v25, %v1530_v11  ;;  %v1705_v36 = vrot.slane %v364_v26, %v1528_v8  ;;  %v413_v37 = vcombine.high %v405_v27, %v405_v27 }
  0x3c   :  { %874 = vmax.xlane.f32.xlu1 %v873_v34  ;;  %v802_v34 = vsel %vm1536_vm2, %v584_v24, -inf  ;;  %v930_v38 = vsel %vm833_vm3, %v801_v29, -inf  ;;  %v644_v40 = vrot.slane %v372_v31, %v1530_v11  ;;  %v421_v41 = vrot.slane %v405_v27, %v1528_v8 }
  0x3d   :  { %v933_v42 = vsel %vm833_vm3, %v802_v34, -inf  ;;  %v810_v43 = vsel %vm1536_vm2, %v616_v35, -inf  ;;  %v1718_v46 = vrot.slane %v413_v37, %v1528_v8  ;;  %v247_v51 = vcombine.high %v1648_v59, %v1648_v59 }
  0x3e   :  { %877 = vmax.xlane.f32.xlu0 %v876_v39  ;;  %v809_v39 = vsel %vm1536_vm2, %v612_v30, -inf  ;;  %v676_v50 = vrot.slane %v421_v41, %v1530_v11  ;;  %v957_v52 = vsel %vm833_vm3, %v810_v43, -inf  ;;  %v345_v62 = vcombine.high %v323_v21, %v323_v21 }
  0x3f   :  { %v954_v47 = vsel %vm833_vm3, %v809_v39, -inf  ;;  %v680_v54 = vrot.slane %v1718_v46, %v1530_v11  ;;  %v394_v1 = vcombine.high %v372_v31, %v372_v31  ;;  %v249_v14 = vcombine.high %v1652_v61, %v1652_v61 }
  0x40   :  { %880 = vmax.xlane.f32.xlu1 %v879_v44  ;;  %v648_v44 = vrot.slane %v1705_v36, %v1530_v11  ;;  %v825_v58 = vsel %vm1536_vm2, %v676_v50, -inf  ;;  %v620_v5 = vrot.slane %v345_v62, %v1530_v11  ;;  %v298_v19 = vcombine.high %v1673_v13, %v1673_v13 }
  0x41   :  { %v826_v63 = vsel %vm1536_vm2, %v680_v54, -inf  ;;  %v652_v12 = vrot.slane %v394_v1, %v1530_v11  ;;  %v202_v21 = vcombine.high %v1612_v33, %v1612_v33  ;;  %v560_v23 = vrot.slane %v249_v14, %v1530_v11 }
  0x42   :  { %883 = vmax.xlane.f32.xlu0 %v882_v49  ;;  %v817_v49 = vsel %vm1536_vm2, %v644_v40, -inf  ;;  %v818_v53 = vsel %vm1536_vm2, %v648_v44, -inf  ;;  %v347_v24 = vcombine.high %v1690_v25, %v1690_v25  ;;  %v251_v26 = vcombine.high %v1626_v45, %v1626_v45 }
  0x43   :  { %v978_v57 = vsel %vm833_vm3, %v817_v49, -inf  ;;  %v981_v59 = vsel %vm833_vm3, %v818_v53, -inf  ;;  %v819_v61 = vsel %vm1536_vm2, %v652_v12, -inf  ;;  %v396_v13 = vcombine.high %v1705_v36, %v1705_v36 }
  0x44   :  { %886 = vmax.xlane.f32.xlu1 %v885_v55  ;;  %v296_v55 = vcombine.high %v274_v6, %v274_v6  ;;  %v443_v6 = vcombine.high %v421_v41, %v421_v41  ;;  %v216_v29 = vrot.slane %v202_v21, %v1528_v8  ;;  %v300_v30 = vcombine.high %v1641_v56, %v1641_v56 }
  0x45   :  { %v984_v25 = vsel %vm833_vm3, %v819_v61, -inf  ;;  %v445_v45 = vcombine.high %v1718_v46, %v1718_v46  ;;  %v796_v31 = vsel %vm1536_vm2, %v560_v23, -inf  ;;  %v265_v34 = vrot.slane %v251_v26, %v1528_v8 }
  0x46   :  { %889 = vmax.xlane.f32.xlu0 %v888_v60  ;;  %v556_v60 = vrot.slane %v247_v51, %v1530_v11  ;;  %v588_v0 = vrot.slane %v296_v55, %v1530_v11  ;;  %v684_v18 = vrot.slane %v443_v6, %v1530_v11  ;;  %v349_v35 = vcombine.high %v1660_v3, %v1660_v3 }
  0x47   :  { %v656_v56 = vrot.slane %v396_v13, %v1530_v11  ;;  %v314_v39 = vrot.slane %v300_v30, %v1528_v8  ;;  %v398_v40 = vcombine.high %v1678_v17, %v1678_v17  ;;  %v915_v41 = vsel %vm833_vm3, %v796_v31, -inf }
  0x48   :  { %892 = vmax.xlane.f32.xlu1 %v891_v2  ;;  %v1002_v2 = vsel %vm833_vm3, %v825_v58, -inf  ;;  %v795_v4 = vsel %vm1536_vm2, %v556_v60, -inf  ;;  %v803_v10 = vsel %vm1536_vm2, %v588_v0, -inf  ;;  %v827_v33 = vsel %vm1536_vm2, %v684_v18, -inf }
  0x49   :  { %v912_v15 = vsel %vm833_vm3, %v795_v4, -inf  ;;  %v1008_v36 = vsel %vm833_vm3, %v827_v33, -inf  ;;  %v1798_v43 = vrot.slane %v265_v34, %v1528_v8  ;;  %v363_v44 = vrot.slane %v349_v35, %v1528_v8 }
  0x4a   :  { %895 = vmax.xlane.f32.xlu0 %v894_v9  ;;  %v1005_v9 = vsel %vm833_vm3, %v826_v63, -inf  ;;  %v1807_v49 = vrot.slane %v314_v39, %v1528_v8  ;;  %v412_v50 = vrot.slane %v398_v40, %v1528_v8  ;;  %v218_v55 = vcombine.high %v216_v29, %v216_v29 }
  0x4b   :  { %v596_v53 = vrot.slane %v1798_v43, %v1530_v11  ;;  %v1816_v54 = vrot.slane %v363_v44, %v1528_v8  ;;  %v316_v4 = vcombine.high %v314_v39, %v314_v39  ;;  %v365_v12 = vcombine.high %v363_v44, %v363_v44 }
  0x4c   :  { %898 = vmax.xlane.f32.xlu1 %v897_v16  ;;  %v811_v16 = vsel %vm1536_vm2, %v620_v5, -inf  ;;  %v628_v60 = vrot.slane %v1807_v49, %v1530_v11  ;;  %v1824_v62 = vrot.slane %v412_v50, %v1528_v8  ;;  %v297_v31 = vcombine.high %v1798_v43, %v1798_v43 }
  0x4d   :  { %v960_v27 = vsel %vm833_vm3, %v811_v16, -inf  ;;  %v805_v0 = vsel %vm1536_vm2, %v596_v53, -inf  ;;  %v660_v1 = vrot.slane %v1816_v54, %v1530_v11  ;;  %v1848_v18 = vrot.slane %v316_v4, %v1528_v8 }
  0x4e   :  { %901 = vmax.xlane.f32.xlu0 %v900_v22  ;;  %v936_v22 = vsel %vm833_vm3, %v803_v10, -inf  ;;  %v813_v6 = vsel %vm1536_vm2, %v628_v60, -inf  ;;  %v942_v14 = vsel %vm833_vm3, %v805_v0, -inf  ;;  %v1856_v23 = vrot.slane %v365_v12, %v1528_v8 }
  0x4f   :  { %v966_v21 = vsel %vm833_vm3, %v813_v6, -inf  ;;  %v395_v39 = vcombine.high %v1816_v54, %v1816_v54  ;;  %v348_v60 = vcombine.high %v1848_v18, %v1848_v18 }
  0x50   :  { %907 = vmax.xlane.f32.xlu1 %v906_v28  ;;  %v592_v28 = vrot.slane %v298_v19, %v1530_v11  ;;  %v414_v19 = vcombine.high %v412_v50, %v412_v50  ;;  %v397_v0 = vcombine.high %v1856_v23, %v1856_v23 }
  0x51   :  { %v640_v4 = vrot.slane %v348_v60, %v1530_v11 }
  0x52   :  { %910 = vmax.xlane.f32.xlu0 %v909_v32  ;;  %v624_v32 = vrot.slane %v347_v24, %v1530_v11  ;;  %v804_v37 = vsel %vm1536_vm2, %v592_v28, -inf  ;;  %v1864_v13 = vrot.slane %v414_v19, %v1528_v8 }
  0x53   :  { %v939_v46 = vsel %vm833_vm3, %v804_v37, -inf }
  0x54   :  { %931 = vmax.xlane.f32.xlu1 %v930_v38  ;;  %v1788_v38 = vrot.slane %v216_v29, %v1528_v8  ;;  %v812_v3 = vsel %vm1536_vm2, %v624_v32, -inf  ;;  %v664_v29 = vrot.slane %v1856_v23, %v1530_v11 }
  0x55   :  { %v963_v51 = vsel %vm833_vm3, %v812_v3, -inf }
  0x56   :  { %934 = vmax.xlane.f32.xlu0 %v933_v42  ;;  %v688_v42 = vrot.slane %v445_v45, %v1530_v11  ;;  %v564_v17 = vrot.slane %v1788_v38, %v1530_v11  ;;  %v248_v30 = vcombine.high %v1788_v38, %v1788_v38  ;;  %v604_v38 = vrot.slane %v297_v31, %v1530_v11 }
  0x58   :  { %955 = vmax.xlane.f32.xlu1 %v954_v47  ;;  %v820_v47 = vsel %vm1536_vm2, %v656_v56, -inf  ;;  %v797_v58 = vsel %vm1536_vm2, %v564_v17, -inf  ;;  %v572_v35 = vrot.slane %v248_v30, %v1530_v11  ;;  %v807_v44 = vsel %vm1536_vm2, %v604_v38, -inf }
  0x59   :  { %v918_v5 = vsel %vm833_vm3, %v797_v58, -inf }
  0x5a   :  { %958 = vmax.xlane.f32.xlu0 %v957_v52  ;;  %v828_v52 = vsel %vm1536_vm2, %v688_v42, -inf  ;;  %v444_v42 = vcombine.high %v1824_v62, %v1824_v62 }
  0x5b   :  { %v1011_v63 = vsel %vm833_vm3, %v828_v52, -inf  ;;  %v948_v52 = vsel %vm833_vm3, %v807_v44, -inf }
  0x5c   :  { %979 = vmax.xlane.f32.xlu1 %v978_v57  ;;  %v987_v57 = vsel %vm833_vm3, %v820_v47, -inf  ;;  %v201_v47 = vcombine.high %v1632_v48, %v1632_v48  ;;  %v700_v50 = vrot.slane %v444_v42, %v1530_v11 }
  0x5e   :  { %982 = vmax.xlane.f32.xlu0 %v981_v59  ;;  %v267_v59 = vcombine.high %v265_v34, %v265_v34  ;;  %v822_v34 = vsel %vm1536_vm2, %v664_v29, -inf  ;;  %v544_v54 = vrot.slane %v201_v47, %v1530_v11 }
  0x5f   :  { %v993_v40 = vsel %vm833_vm3, %v822_v34, -inf }
  0x60   :  { %1003 = vmax.xlane.f32.xlu1 %v1002_v2  ;;  %v1832_v2 = vrot.slane %v218_v55, %v1528_v8  ;;  %v1840_v10 = vrot.slane %v267_v59, %v1528_v8  ;;  %v696_v8 = vrot.slane %v1864_v13, %v1530_v11  ;;  %v792_v59 = vsel %vm1536_vm2, %v544_v54, -inf }
  0x61   :  { %v903_v6 = vsel %vm833_vm3, %v792_v59, -inf }
  0x62   :  { %1006 = vmax.xlane.f32.xlu0 %v1005_v9  ;;  %v692_v9 = vrot.slane %v1824_v62, %v1530_v11  ;;  %v568_v16 = vrot.slane %v1832_v2, %v1530_v11  ;;  %v600_v61 = vrot.slane %v1840_v10, %v1530_v11  ;;  %v830_v37 = vsel %vm1536_vm2, %v696_v8, -inf }
  0x63   :  { %v1017_v43 = vsel %vm833_vm3, %v830_v37, -inf  ;;  %v299_v48 = vcombine.high %v1840_v10, %v1840_v10  ;;  %v672_v10 = vrot.slane %v397_v0, %v1530_v11 }
  0x64   :  { %913 = vmax.xlane.f32.xlu1 %v912_v15  ;;  %v821_v15 = vsel %vm1536_vm2, %v660_v1, -inf  ;;  %v798_v26 = vsel %vm1536_vm2, %v568_v16, -inf  ;;  %v806_v28 = vsel %vm1536_vm2, %v600_v61, -inf }
  0x65   :  { %v990_v24 = vsel %vm833_vm3, %v821_v15, -inf  ;;  %v945_v32 = vsel %vm833_vm3, %v806_v28, -inf }
  0x66   :  { %937 = vmax.xlane.f32.xlu0 %v936_v22  ;;  %v829_v22 = vsel %vm1536_vm2, %v692_v9, -inf }
  0x67   :  { %v1014_v33 = vsel %vm833_vm3, %v829_v22, -inf }
  0x68   :  { %961 = vmax.xlane.f32.xlu1 %v960_v27  ;;  %v632_v27 = vrot.slane %v1848_v18, %v1530_v11  ;;  %v824_v18 = vsel %vm1536_vm2, %v672_v10, -inf }
  0x69   :  { %v999_v22 = vsel %vm833_vm3, %v824_v18, -inf }
  0x6a   :  { %985 = vmax.xlane.f32.xlu0 %v984_v25  ;;  %v921_v25 = vsel %vm833_vm3, %v798_v26, -inf  ;;  %v814_v45 = vsel %vm1536_vm2, %v632_v27, -inf }
  0x6b   :  { %v969_v56 = vsel %vm833_vm3, %v814_v45, -inf }
  0x6c   :  { %1009 = vmax.xlane.f32.xlu1 %v1008_v36  ;;  %v346_v36 = vcombine.high %v1807_v49, %v1807_v49 }
  0x6e   :  { %916 = vmax.xlane.f32.xlu0 %v915_v41  ;;  %v799_v41 = vsel %vm1536_vm2, %v572_v35, -inf  ;;  %v636_v3 = vrot.slane %v346_v36, %v1530_v11 }
  0x6f   :  { %v924_v17 = vsel %vm833_vm3, %v799_v41, -inf }
  0x70   :  { %940 = vmax.xlane.f32.xlu1 %v939_v46  ;;  %v668_v46 = vrot.slane %v395_v39, %v1530_v11  ;;  %v815_v49 = vsel %vm1536_vm2, %v636_v3, -inf }
  0x71   :  { %v972_v55 = vsel %vm833_vm3, %v815_v49, -inf }
  0x72   :  { %964 = vmax.xlane.f32.xlu0 %v963_v51  ;;  %v250_v51 = vcombine.high %v1832_v2, %v1832_v2  ;;  %v823_v53 = vsel %vm1536_vm2, %v668_v46, -inf }
  0x73   :  { %v996_v62 = vsel %vm833_vm3, %v823_v53, -inf }
  0x74   :  { %988 = vmax.xlane.f32.xlu1 %v987_v57  ;;  %v831_v57 = vsel %vm1536_vm2, %v700_v50, -inf  ;;  %v576_v58 = vrot.slane %v250_v51, %v1530_v11 }
  0x75   :  { %v1020_v1 = vsel %vm833_vm3, %v831_v57, -inf }
  0x76   :  { %1012 = vmax.xlane.f32.xlu0 %v1011_v63  ;;  %v608_v63 = vrot.slane %v299_v48, %v1530_v11  ;;  %v800_v2 = vsel %vm1536_vm2, %v576_v58, -inf }
  0x77   :  { %v927_v12 = vsel %vm833_vm3, %v800_v2, -inf }
  0x78   :  { %919 = vmax.xlane.f32.xlu1 %v918_v5  ;;  %v446_v5 = vcombine.high %v1864_v13, %v1864_v13  ;;  %v808_v9 = vsel %vm1536_vm2, %v608_v63, -inf }
  0x79   :  { %v951_v16 = vsel %vm833_vm3, %v808_v9, -inf }
  0x7a   :  { %943 = vmax.xlane.f32.xlu0 %v942_v14  ;;  %v816_v14 = vsel %vm1536_vm2, %v640_v4, -inf  ;;  %v704_v15 = vrot.slane %v446_v5, %v1530_v11 }
  0x7b   :  { %v975_v19 = vsel %vm833_vm3, %v816_v14, -inf }
  0x7c   :  { %967 = vmax.xlane.f32.xlu1 %v966_v21  ;;  %v832_v21 = vsel %vm1536_vm2, %v704_v15, -inf }
  0x7d   :  { %v1023_v61 = vsel %vm833_vm3, %v832_v21, -inf }
  0x7e   :  { %991 = vmax.xlane.f32.xlu0 %v990_v24 }
  0x80   :  { %1015 = vmax.xlane.f32.xlu1 %v1014_v33 }
  0x82   :  { %922 = vmax.xlane.f32.xlu0 %v921_v25 }
  0x84   :  { %946 = vmax.xlane.f32.xlu1 %v945_v32 }
  0x86   :  { %970 = vmax.xlane.f32.xlu0 %v969_v56 }
  0x88   :  { %994 = vmax.xlane.f32.xlu1 %v993_v40 }
  0x8a   :  { %1018 = vmax.xlane.f32.xlu0 %v1017_v43 }
  0x8c   :  { %925 = vmax.xlane.f32.xlu1 %v924_v17 }
  0x8e   :  { %949 = vmax.xlane.f32.xlu0 %v948_v52 }
  0x90   :  { %973 = vmax.xlane.f32.xlu1 %v972_v55 }
  0x92   :  { %997 = vmax.xlane.f32.xlu0 %v996_v62 }
  0x94   :  { %1021 = vmax.xlane.f32.xlu1 %v1020_v1 }
  0x96   :  { %904 = vmax.xlane.f32.xlu0 %v903_v6 }
  0x98   :  { %928 = vmax.xlane.f32.xlu1 %v927_v12 }
  0x9a   :  { %952 = vmax.xlane.f32.xlu0 %v951_v16 }
  0x9c   :  { %976 = vmax.xlane.f32.xlu1 %v975_v19 }
  0x9e   :  { %1000 = vmax.xlane.f32.xlu0 %v999_v22 }
  0xa0   :  { %1024 = vmax.xlane.f32.xlu1 %v1023_v61 }
  0xaf   :  { %v836_v11 = vpop.xlane.xlu0 %835 }
  0xb0   :  { %v1093_v13 = vrot.slane %v836_v11, %v1526_v7 }
  0xb1   :  { %v842_v23 = vpop.xlane.xlu1 %841 }
  0xb2   :  { %v1101_v28 = vrot.slane %v842_v23, %v1526_v7 }
  0xb3   :  { %v860_v24 = vpop.xlane.xlu0 %859 }
  0xb4   :  { %v1125_v35 = vrot.slane %v860_v24, %v1526_v7 }
  0xb5   :  { %v863_v26 = vpop.xlane.xlu1 %862 }
  0xb6   :  { %v1129_v36 = vrot.slane %v863_v26, %v1526_v7 }
  0xb7   :  { %v839_v27 = vpop.xlane.xlu0 %838 }
  0xb8   :  { %v1097_v33 = vrot.slane %v839_v27, %v1526_v7  ;;  %v1360_v3 = vsel %vm1346_vm4, %v1129_v36, %v1125_v35 }
  0xb9   :  { %v845_v20 = vpop.xlane.xlu1 %844 }
  0xba   :  { %v1347_v29 = vsel %vm1346_vm4, %v1097_v33, %v1093_v13  ;;  %v1105_v30 = vrot.slane %v845_v20, %v1526_v7 }
  0xbb   :  { %v848_v25 = vpop.xlane.xlu0 %847  ;;  %v1349_v45 = vsel %vm1348_vm5, %v1101_v28, %v1347_v29 }
  0xbc   :  { %v1109_v31 = vrot.slane %v848_v25, %v1526_v7  ;;  %v1351_v32 = vsel %vm1350_vm6, %v1105_v30, %v1349_v45 }
  0xbd   :  { %v851_v8 = vpop.xlane.xlu1 %850 }
  0xbe   :  { %v1113_v56 = vrot.slane %v851_v8, %v1526_v7  ;;  %v1353_v38 = vsel %vm1352_vm7, %v1109_v31, %v1351_v32 }
  0xbf   :  { %v866_v34 = vpop.xlane.xlu0 %865 }
  0xc0   :  { %v1133_v39 = vrot.slane %v866_v34, %v1526_v7  ;;  %v1355_v42 = vsel %vm1354_vm8, %v1113_v56, %v1353_v38 }
  0xc1   :  { %v869_v37 = vpop.xlane.xlu1 %868 }
  0xc2   :  { %v1137_v43 = vrot.slane %v869_v37, %v1526_v7  ;;  %v1361_v46 = vsel %vm1348_vm5, %v1133_v39, %v1360_v3 }
  0xc3   :  { %v854_v40 = vpop.xlane.xlu0 %853 }
  0xc4   :  { %v1117_v41 = vrot.slane %v854_v40, %v1526_v7  ;;  %v1362_v52 = vsel %vm1350_vm6, %v1137_v43, %v1361_v46 }
  0xc5   :  { %v857_v44 = vpop.xlane.xlu1 %856 }
  0xc6   :  { %v1357_v47 = vsel %vm1356_vm9, %v1117_v41, %v1355_v42  ;;  %v1121_v17 = vrot.slane %v857_v44, %v1526_v7 }
  0xc7   :  { %v872_v49 = vpop.xlane.xlu0 %871 }
  0xc8   :  { %v1359_v50 = vsel %vm1358_vm10, %v1121_v17, %v1357_v47  ;;  %v1141_v51 = vrot.slane %v872_v49, %v1526_v7 }
  0xc9   :  { %1418 = vst.msk [vmem:[#allocation5] sm:$0xff] %vm1417_vm11, %v1359_v50  ;;  %v875_v53 = vpop.xlane.xlu1 %874 }
  0xca   :  { %v1363_v54 = vsel %vm1352_vm7, %v1141_v51, %v1362_v52  ;;  %v1145_v48 = vrot.slane %v875_v53, %v1526_v7 }
  0xcb   :  { %v878_v55 = vpop.xlane.xlu0 %877 }
  0xcc   :  { %v1364_v57 = vsel %vm1354_vm8, %v1145_v48, %v1363_v54  ;;  %v1149_v58 = vrot.slane %v878_v55, %v1526_v7 }
  0xcd   :  { %v881_v60 = vpop.xlane.xlu1 %880 }
  0xce   :  { %v1365_v62 = vsel %vm1356_vm9, %v1149_v58, %v1364_v57  ;;  %v1153_v59 = vrot.slane %v881_v60, %v1526_v7 }
  0xcf   :  { %v884_v63 = vpop.xlane.xlu0 %883 }
  0xd0   :  { %v1366_v0 = vsel %vm1358_vm10, %v1153_v59, %v1365_v62  ;;  %v1157_v1 = vrot.slane %v884_v63, %v1526_v7 }
  0xd1   :  { %1419 = vst.msk [vmem:[#allocation5 + $0x8] sm:$0xff] %vm1417_vm11, %v1366_v0  ;;  %v887_v2 = vpop.xlane.xlu1 %886 }
  0xd2   :  { %v1161_v4 = vrot.slane %v887_v2, %v1526_v7 }
  0xd3   :  { %v890_v5 = vpop.xlane.xlu0 %889 }
  0xd4   :  { %v1367_v6 = vsel %vm1346_vm4, %v1161_v4, %v1157_v1  ;;  %v1165_v9 = vrot.slane %v890_v5, %v1526_v7 }
  0xd5   :  { %v893_v10 = vpop.xlane.xlu1 %892 }
  0xd6   :  { %v1368_v12 = vsel %vm1348_vm5, %v1165_v9, %v1367_v6  ;;  %v1169_v14 = vrot.slane %v893_v10, %v1526_v7 }
  0xd7   :  { %v896_v15 = vpop.xlane.xlu0 %895 }
  0xd8   :  { %v1369_v16 = vsel %vm1350_vm6, %v1169_v14, %v1368_v12  ;;  %v1173_v18 = vrot.slane %v896_v15, %v1526_v7 }
  0xd9   :  { %v899_v19 = vpop.xlane.xlu1 %898 }
  0xda   :  { %v1370_v21 = vsel %vm1352_vm7, %v1173_v18, %v1369_v16  ;;  %v1177_v22 = vrot.slane %v899_v19, %v1526_v7 }
  0xdb   :  { %v902_v61 = vpop.xlane.xlu0 %901 }
  0xdc   :  { %v1371_v11 = vsel %vm1354_vm8, %v1177_v22, %v1370_v21  ;;  %v1181_v23 = vrot.slane %v902_v61, %v1526_v7 }
  0xdd   :  { %v908_v24 = vpop.xlane.xlu1 %907 }
  0xde   :  { %v1995_v26 = vsel %vm1356_vm9, %v1181_v23, %v1371_v11  ;;  %v1189_v13 = vrot.slane %v908_v24, %v1526_v7 }
  0xdf   :  { %v911_v27 = vpop.xlane.xlu0 %910 }
  0xe0   :  { %v1193_v33 = vrot.slane %v911_v27, %v1526_v7 }
  0xe1   :  { %v932_v20 = vpop.xlane.xlu1 %931 }
  0xe2   :  { %v1374_v28 = vsel %vm1346_vm4, %v1193_v33, %v1189_v13  ;;  %v1221_v30 = vrot.slane %v932_v20, %v1526_v7 }
  0xe3   :  { %v935_v29 = vpop.xlane.xlu0 %934 }
  0xe4   :  { %v1225_v25 = vrot.slane %v935_v29, %v1526_v7 }
  0xe5   :  { %v956_v45 = vpop.xlane.xlu1 %955 }
  0xe6   :  { %v1381_v8 = vsel %vm1346_vm4, %v1225_v25, %v1221_v30  ;;  %v1253_v1 = vrot.slane %v956_v45, %v1526_v7 }
  0xe7   :  { %v959_v31 = vpop.xlane.xlu0 %958 }
  0xe8   :  { %v1257_v58 = vrot.slane %v959_v31, %v1526_v7 }
  0xe9   :  { %v980_v32 = vpop.xlane.xlu1 %979 }
  0xea   :  { %v1285_v2 = vrot.slane %v980_v32, %v1526_v7  ;;  %v1388_v14 = vsel %vm1346_vm4, %v1257_v58, %v1253_v1 }
  0xeb   :  { %v983_v34 = vpop.xlane.xlu0 %982 }
  0xec   :  { %v1289_v60 = vrot.slane %v983_v34, %v1526_v7 }
  0xed   :  { %v1004_v35 = vpop.xlane.xlu1 %1003 }
  0xee   :  { %v1317_v6 = vrot.slane %v1004_v35, %v1526_v7  ;;  %v1395_v15 = vsel %vm1346_vm4, %v1289_v60, %v1285_v2 }
  0xef   :  { %v1007_v36 = vpop.xlane.xlu0 %1006 }
  0xf0   :  { %v1321_v62 = vrot.slane %v1007_v36, %v1526_v7 }
  0xf1   :  { %v914_v56 = vpop.xlane.xlu1 %913 }
  0xf2   :  { %v1197_v59 = vrot.slane %v914_v56, %v1526_v7  ;;  %v1402_v19 = vsel %vm1346_vm4, %v1321_v62, %v1317_v6 }
  0xf3   :  { %v938_v37 = vpop.xlane.xlu0 %937 }
  0xf4   :  { %v1229_v63 = vrot.slane %v938_v37, %v1526_v7  ;;  %v1375_v21 = vsel %vm1348_vm5, %v1197_v59, %v1374_v28 }
  0xf5   :  { %v962_v38 = vpop.xlane.xlu1 %961 }
  0xf6   :  { %v1261_v4 = vrot.slane %v962_v38, %v1526_v7  ;;  %v1382_v22 = vsel %vm1348_vm5, %v1229_v63, %v1381_v8 }
  0xf7   :  { %v986_v39 = vpop.xlane.xlu0 %985 }
  0xf8   :  { %v1293_v5 = vrot.slane %v986_v39, %v1526_v7  ;;  %v1389_v23 = vsel %vm1348_vm5, %v1261_v4, %v1388_v14 }
  0xf9   :  { %v2003_v40 = vpop.xlane.xlu1 %1009 }
  0xfa   :  { %v1396_v24 = vsel %vm1348_vm5, %v1293_v5, %v1395_v15  ;;  %v1325_v27 = vrot.slane %v2003_v40, %v1526_v7 }
  0xfb   :  { %v917_v41 = vpop.xlane.xlu0 %916 }
  0xfc   :  { %v1201_v9 = vrot.slane %v917_v41, %v1526_v7  ;;  %v1403_v62 = vsel %vm1348_vm5, %v1325_v27, %v1402_v19 }
  0xfd   :  { %v941_v3 = vpop.xlane.xlu1 %940 }
  0xfe   :  { %v1233_v10 = vrot.slane %v941_v3, %v1526_v7  ;;  %v1376_v33 = vsel %vm1350_vm6, %v1201_v9, %v1375_v21 }
  0xff   :  { %v965_v42 = vpop.xlane.xlu0 %964 }
 0x100   :  { %v1265_v16 = vrot.slane %v965_v42, %v1526_v7  ;;  %v1383_v20 = vsel %vm1350_vm6, %v1233_v10, %v1382_v22 }
 0x101   :  { %v989_v43 = vpop.xlane.xlu1 %988 }
 0x102   :  { %v1297_v18 = vrot.slane %v989_v43, %v1526_v7  ;;  %v1390_v25 = vsel %vm1350_vm6, %v1265_v16, %v1389_v23 }
 0x103   :  { %v2005_v44 = vpop.xlane.xlu0 %1012 }
 0x104   :  { %v1397_v45 = vsel %vm1350_vm6, %v1297_v18, %v1396_v24  ;;  %v1329_v32 = vrot.slane %v2005_v44, %v1526_v7 }
 0x105   :  { %v920_v46 = vpop.xlane.xlu1 %919 }
 0x106   :  { %v1205_v61 = vrot.slane %v920_v46, %v1526_v7  ;;  %v1404_v1 = vsel %vm1350_vm6, %v1329_v32, %v1403_v62 }
 0x107   :  { %v944_v47 = vpop.xlane.xlu0 %943 }
 0x108   :  { %v1237_v28 = vrot.slane %v944_v47, %v1526_v7  ;;  %v1377_v34 = vsel %vm1352_vm7, %v1205_v61, %v1376_v33 }
 0x109   :  { %v2007_v17 = vpop.xlane.xlu1 %967 }
 0x10a   :  { %v1269_v35 = vrot.slane %v2007_v17, %v1526_v7  ;;  %v1384_v41 = vsel %vm1352_vm7, %v1237_v28, %v1383_v20 }
 0x10b   :  { %v2009_v49 = vpop.xlane.xlu0 %991 }
 0x10c   :  { %v1301_v3 = vrot.slane %v2009_v49, %v1526_v7 }
 0x10d   :  { %v2011_v50 = vpop.xlane.xlu1 %1015 }
 0x10e   :  { %v1333_v49 = vrot.slane %v2011_v50, %v1526_v7  ;;  %v1398_v50 = vsel %vm1352_vm7, %v1301_v3, %v1397_v45 }
 0x10f   :  { %v923_v51 = vpop.xlane.xlu0 %922 }
 0x110   :  { %v1209_v13 = vrot.slane %v923_v51, %v1526_v7  ;;  %v1391_v51 = vsel %vm1352_vm7, %v1269_v35, %v1390_v25  ;;  %v1405_v5 = vsel %vm1352_vm7, %v1333_v49, %v1404_v1 }
 0x111   :  { %v947_v52 = vpop.xlane.xlu1 %946 }
 0x112   :  { %v1241_v8 = vrot.slane %v947_v52, %v1526_v7  ;;  %v1378_v37 = vsel %vm1354_vm8, %v1209_v13, %v1377_v34 }
 0x113   :  { %v2013_v53 = vpop.xlane.xlu0 %970 }
 0x114   :  { %v1273_v38 = vrot.slane %v2013_v53, %v1526_v7  ;;  %v1385_v46 = vsel %vm1354_vm8, %v1241_v8, %v1384_v41 }
 0x115   :  { %v2015_v54 = vpop.xlane.xlu1 %994 }
 0x117   :  { %v2017_v48 = vpop.xlane.xlu0 %1018 }
 0x119   :  { %v926_v55 = vpop.xlane.xlu1 %925 }
 0x11a   :  { %v1213_v29 = vrot.slane %v926_v55, %v1526_v7 }
 0x11b   :  { %v950_v57 = vpop.xlane.xlu0 %949 }
 0x11c   :  { %v1245_v36 = vrot.slane %v950_v57, %v1526_v7  ;;  %v1379_v42 = vsel %vm1356_vm9, %v1213_v29, %v1378_v37  ;;  %v1392_v57 = vsel %vm1354_vm8, %v1273_v38, %v1391_v51 }
 0x11d   :  { %v2024_v0 = vpop.xlane.xlu1 %973 }
 0x11e   :  { %v1277_v43 = vrot.slane %v2024_v0, %v1526_v7  ;;  %v1386_v52 = vsel %vm1356_vm9, %v1245_v36, %v1385_v46 }
 0x11f   :  { %v2033_v12 = vpop.xlane.xlu0 %997 }
 0x120   :  { %v1309_v53 = vrot.slane %v2033_v12, %v1526_v7  ;;  %v1393_v59 = vsel %vm1356_vm9, %v1277_v43, %v1392_v57 }
 0x121   :  { %v2043_v11 = vpop.xlane.xlu1 %1021 }
 0x122   :  { %v1341_v63 = vrot.slane %v2043_v11, %v1526_v7 }
 0x123   :  { %v905_v30 = vpop.xlane.xlu0 %904 }
 0x124   :  { %v1185_v31 = vrot.slane %v905_v30, %v1526_v7 }
 0x125   :  { %v929_v56 = vpop.xlane.xlu1 %928 }
 0x126   :  { %v1373_v39 = vsel %vm1358_vm10, %v1185_v31, %v1995_v26  ;;  %v1217_v40 = vrot.slane %v929_v56, %v1526_v7  ;;  %v1305_v26 = vrot.slane %v2015_v54, %v1526_v7  ;;  %v1337_v54 = vrot.slane %v2017_v48, %v1526_v7 }
 0x127   :  { %1420 = vst.msk [vmem:[#allocation5 + $0x10] sm:$0xff] %vm1417_vm11, %v1373_v39  ;;  %v953_v44 = vpop.xlane.xlu0 %952 }
 0x128   :  { %v1380_v47 = vsel %vm1358_vm10, %v1217_v40, %v1379_v42  ;;  %v1249_v17 = vrot.slane %v953_v44, %v1526_v7  ;;  %v1399_v48 = vsel %vm1354_vm8, %v1305_v26, %v1398_v50  ;;  %v1406_v10 = vsel %vm1354_vm8, %v1337_v54, %v1405_v5 }
 0x129   :  { %1421 = vst.msk [vmem:[#allocation5 + $0x18] sm:$0xff] %vm1417_vm11, %v1380_v47  ;;  %v977_v55 = vpop.xlane.xlu1 %976  ;;  %v1400_v6 = vsel %vm1356_vm9, %v1309_v53, %v1399_v48  ;;  %v1407_v15 = vsel %vm1356_vm9, %v1341_v63, %v1406_v10 }
 0x12a   :  { %v1387_v58 = vsel %vm1358_vm10, %v1249_v17, %v1386_v52  ;;  %v1281_v60 = vrot.slane %v977_v55, %v1526_v7 }
 0x12b   :  { %1422 = vst.msk [vmem:[#allocation5 + $0x20] sm:$0xff] %vm1417_vm11, %v1387_v58  ;;  %v1001_v0 = vpop.xlane.xlu0 %1000 }
 0x12c   :  { %v1394_v2 = vsel %vm1358_vm10, %v1281_v60, %v1393_v59  ;;  %v1313_v4 = vrot.slane %v1001_v0, %v1526_v7 }
 0x12d   :  { %1423 = vst.msk [vmem:[#allocation5 + $0x28] sm:$0xff] %vm1417_vm11, %v1394_v2  ;;  %v1025_v9 = vpop.xlane.xlu1 %1024 }
 0x12e   :  { %v1401_v12 = vsel %vm1358_vm10, %v1313_v4, %v1400_v6  ;;  %v1345_v14 = vrot.slane %v1025_v9, %v1526_v7 }
 0x12f   :  { %1424 = vst.msk [vmem:[#allocation5 + $0x30] sm:$0xff] %vm1417_vm11, %v1401_v12 }
 0x130   :  { %v1408_v16 = vsel %vm1358_vm10, %v1345_v14, %v1407_v15 }
 0x131   :  { %1425 = vst.msk [vmem:[#allocation5 + $0x38] sm:$0xff] %vm1417_vm11, %v1408_v16 }
 0x132   :  { %1481 = shalt.err (!%p1478_p12)
}
 0x133   :  { %s1482_s24 = scalar_lea.hbm %s2130_s1, 1024 }
 0x134   :  { %p1483_p13 = scmp.ne.s32.totalorder %s2130_s1, %s1482_s24  ;;  %p1486_p0 = scmp.lt.u32.totalorder %s1482_s24, %s2130_s1 }
 0x136   :  { %p1488_p1 = pnand %p1486_p0, %p1483_p13 }
 0x138   :  { %1491 = shalt.err (!%p1488_p1)
}
 0x139   :  { %1437 = dma.vmem_to_hbm [thread:$0]  %s1432_s20, 1024, %s2130_s1, [#allocation4], %s1497_s16, %s1497_s16, %s1498_s17  }
 0x13a   :  { %1494 = dma.done.wait [#allocation4], 1024  }
 0x13b   :  { %1495 = vsyncadd [#allocation4], 4294966272 }
 0x13c   :  { %1441 = vsyncpa [#allocation3], 1 }
 0x13d   :  { %1442 = vsyncpa [#allocation4], 1 }

</bundles_post_ra>
